<compile_context>
chip_gen: v7x
topology: tpu7x:2x2x1
jax: 0.10.0
libtpu: 0.0.40
codegen_flags: <defaults>
</compile_context>

<pallas_src>
import functools

import jax
import jax.numpy as jnp
from jax import lax
from jax.experimental import pallas as pl
from jax.experimental.pallas import tpu as pltpu

_LANES = 128


def _lowest(dtype):
    dtype = jnp.dtype(dtype)
    if jnp.issubdtype(dtype, jnp.floating):
        return jnp.array(-jnp.inf, dtype)
    return jnp.array(jnp.iinfo(dtype).min, dtype)


def _device_kind():
    try:
        return jax.devices()[0].device_kind.lower()
    except Exception:
        return ""


def _greedy_kernel(x_ref, tok_ref, max_sc, idx_sc, *, vocab, tv, grid_v, mask_tail):
    """Per-lane running argmax over the vocab (lane) axis.

    Grid = (batch_tiles, vocab_tiles); vocab is the trailing "arbitrary" reduction
    axis.  max_sc / idx_sc are (tb, acc_lanes) per-lane accumulators that persist
    across vocab tiles.  idx_sc stores only the winning chunk's base index; the
    lane offset is added once in the epilogue.  Strict '>' keeps the earliest index
    per lane; the epilogue picks the smallest index among lanes at the global max.
    """
    k = pl.program_id(1)
    tb = x_ref.shape[0]
    acc_lanes = max_sc.shape[-1]
    acc_dtype = max_sc.dtype
    fill = _lowest(acc_dtype)
    n_chunks = tv // acc_lanes          # tv is a multiple of acc_lanes (wrapper)

    @pl.when(k == 0)
    def _():
        max_sc[...] = jnp.full(max_sc.shape, fill, acc_dtype)
        idx_sc[...] = jnp.zeros(idx_sc.shape, idx_sc.dtype)

    def fold_chunk(c, carry, *, masked, base):
        # base: python int (static, last tile) or traced int32 (steady state)
        run_max, run_idx = carry
        start = c * acc_lanes
        if not isinstance(c, int):
            start = pl.multiple_of(start, acc_lanes)
        chunk = x_ref[:, pl.ds(start, acc_lanes)].astype(acc_dtype)
        chunk_base = base + c * acc_lanes                  # scalar
        if masked:                                         # tail-only: 1 chunk max
            lane = lax.broadcasted_iota(jnp.int32, (tb, acc_lanes), 1)
            chunk = jnp.where(lane < vocab - chunk_base, chunk, fill)
        better = chunk > run_max                           # strict > -> earliest wins
        return (jnp.where(better, chunk, run_max),
                jnp.where(better, chunk_base, run_idx))    # scalar splat select

    def sweep(n, carry, base):
        if n <= 0:
            return carry
        if n <= 16:
            for c in range(n):                             # fully unrolled, LLO-visible
                carry = fold_chunk(c, carry, masked=False, base=base)
            return carry
        return lax.fori_loop(
            0, n,
            lambda c, cr: fold_chunk(c, cr, masked=False, base=base),
            carry, unroll=8)

    def steady_fold():
        carry = (max_sc[...], idx_sc[...])
        carry = sweep(n_chunks, carry, base=k * tv)
        max_sc[...], idx_sc[...] = carry

    def tail_fold():
        # Only the last vocab tile can overrun the true vocab; its base is static.
        static_base = (grid_v - 1) * tv
        valid = vocab - static_base                        # static, 0 < valid <= tv
        n_full = valid // acc_lanes
        carry = (max_sc[...], idx_sc[...])
        carry = sweep(n_full, carry, base=static_base)     # unmasked full chunks
        if (valid % acc_lanes) != 0:                       # single masked tail chunk
            carry = fold_chunk(n_full, carry, masked=True, base=static_base)
        # chunks entirely past `vocab` are skipped
        max_sc[...], idx_sc[...] = carry

    if mask_tail:
        if grid_v > 1:
            @pl.when(k != grid_v - 1)
            def _():
                steady_fold()

        @pl.when(k == grid_v - 1)
        def _():
            tail_fold()
    else:
        steady_fold()

    @pl.when(k == grid_v - 1)
    def _():
        m = max_sc[...]
        lane = lax.broadcasted_iota(jnp.int32, idx_sc.shape, 1)
        full_idx = idx_sc[...] + lane                      # winning chunk base + lane
        gmax = jnp.max(m, axis=-1, keepdims=True)          # XLU, once per batch tile
        cand = jnp.where(m == gmax, full_idx, jnp.iinfo(jnp.int32).max)
        tok_ref[...] = jnp.min(cand, axis=-1, keepdims=True)


def greedy_head(m_logits, *, tb=None, tv=None, vmem_limit_bytes=None):
    """token = argmax over last axis, keepdims=True (GreedyHead.forward)."""
    orig_shape = m_logits.shape
    vocab = orig_shape[-1]
    x = m_logits.reshape(-1, vocab)
    batch = x.shape[0]
    dtype = x.dtype
    itemsize = jnp.dtype(dtype).itemsize

    kind = _device_kind()
    is_v5 = "v5" in kind
    is_v7 = "v7" in kind

    # v5e has no native bf16 VPU: accumulate/compare in f32 (one upcast per chunk).
    # On v6e/v7x keep the native dtype to halve accumulator vregs.
    if jnp.issubdtype(dtype, jnp.floating) and itemsize < 4 and is_v5:
        acc_dtype = jnp.float32
    else:
        acc_dtype = dtype
    acc_itemsize = jnp.dtype(acc_dtype).itemsize

    # Packed-sublane multiple: 8 (f32) / 16 (bf16) / 32 (int8, fp8).
    sub_mult = max(8, 32 // itemsize)

    # Batch tile: small enough that the (tb,128) max/idx carries live in vregs for
    # the whole vocab fold (no accumulator spills).  Ragged last batch tile reads
    # undefined padding rows, but rows are independent and OOB output rows are
    # dropped on writeback.
    if tb is None:
        cap = 128 if acc_itemsize <= 2 else 64
        tb = min(batch, cap) if batch % sub_mult == 0 else batch
        # v7x: keep >= 2 steps on the "parallel" batch axis so both TensorCores
        # contribute HBM read bandwidth.
        if is_v7 and batch // tb < 2 and batch >= 2 * sub_mult:
            tb = max(sub_mult, (batch // 2) // sub_mult * sub_mult)
    assert tb == batch or tb % 8 == 0, tb

    # Per-buffer streaming budget (input is double-buffered by the pipeline).
    budget = (8 << 20) if ("v6" in kind or is_v7) else (4 << 20)

    # Vocab tile: lane multiple, as wide as the budget allows; ragged tail masked
    # in-kernel (never padded on the host).
    if vocab <= _LANES:
        tv = vocab
    elif tv is None:
        cap = max(_LANES, (budget // max(1, tb * itemsize)) // _LANES * _LANES)
        tv = min(pl.cdiv(vocab, _LANES) * _LANES, cap)
    else:
        tv = max(_LANES, (tv // _LANES) * _LANES)   # enforce lane multiple
    assert tv % _LANES == 0 or tv == vocab, tv

    grid_b = pl.cdiv(batch, tb)
    grid_v = pl.cdiv(vocab, tv)
    mask_tail = (grid_v * tv) != vocab
    acc_lanes = min(_LANES, tv)

    kernel = functools.partial(_greedy_kernel, vocab=vocab, tv=tv,
                               grid_v=grid_v, mask_tail=mask_tail)

    cparams = dict(dimension_semantics=("parallel", "arbitrary"))
    if vmem_limit_bytes is not None:
        cparams["vmem_limit_bytes"] = vmem_limit_bytes

    # TODO(synk): on v7x with decode-size batches (grid_b == 1 and batch too small
    # to split), shard the vocab axis across the two TensorCores (core_map /
    # CORE_PARALLEL) with per-core partial (max, idx) accumulators and a cross-core merge.
    tok = pl.pallas_call(
        kernel,
        out_shape=jax.ShapeDtypeStruct((batch, 1), jnp.int32),
        grid_spec=pltpu.PrefetchScalarGridSpec(
            num_scalar_prefetch=0,
            grid=(grid_b, grid_v),
            in_specs=[pl.BlockSpec((tb, tv), lambda i, k: (i, k))],
            out_specs=pl.BlockSpec((tb, 1), lambda i, k: (i, 0)),
            scratch_shapes=[
                pltpu.VMEM((tb, acc_lanes), acc_dtype),   # running per-lane max
                pltpu.VMEM((tb, acc_lanes), jnp.int32),   # running per-lane chunk base
            ],
        ),
        compiler_params=pltpu.CompilerParams(**cparams),
        cost_estimate=pl.CostEstimate(
            flops=batch * vocab,
            transcendentals=0,
            bytes_accessed=batch * vocab * itemsize + batch * 4),
    )(x)

    return tok.reshape(*orig_shape[:-1], 1)


if __name__ == "__main__":
    key = jax.random.PRNGKey(0)

    # Llama-head-style logits: (batch, vocab), vocab on the lane axis, bf16.
    m_logits = jax.random.normal(key, (2, 512), dtype=jnp.bfloat16)
    token = jax.block_until_ready(greedy_head(m_logits))
    ref = jnp.argmax(m_logits.astype(jnp.float32), axis=-1, keepdims=True).astype(jnp.int32)
    assert token.shape == (2, 1), token.shape
    assert token.dtype == jnp.int32, token.dtype
    assert bool(jnp.all(token == ref)), (token, ref)

    # Ragged vocab tail + multi-tile f32 path (exercises steady_fold / tail_fold split).
    x2 = jax.random.normal(jax.random.PRNGKey(1), (3, 640), dtype=jnp.float32)
    tok2 = jax.block_until_ready(greedy_head(x2, tv=256))
    ref2 = jnp.argmax(x2, axis=-1, keepdims=True).astype(jnp.int32)
    assert bool(jnp.all(tok2 == ref2)), (tok2, ref2)

    # vocab > 128 and not a multiple of 128 with user tv == vocab (previously this
    # silently dropped the tail ids); wrapper now rounds tv and masks in-kernel.
    x3 = jax.random.normal(jax.random.PRNGKey(2), (4, 300), dtype=jnp.float32)
    tok3 = jax.block_until_ready(greedy_head(x3, tv=300))
    ref3 = jnp.argmax(x3, axis=-1, keepdims=True).astype(jnp.int32)
    assert bool(jnp.all(tok3 == ref3)), (tok3, ref3)

    # 3-D logits (batch, seq, vocab) with a small (< 128-lane) vocab.
    x4 = jax.random.normal(jax.random.PRNGKey(3), (2, 3, 64), dtype=jnp.bfloat16)
    tok4 = jax.block_until_ready(greedy_head(x4))
    ref4 = jnp.argmax(x4.astype(jnp.float32), axis=-1, keepdims=True).astype(jnp.int32)
    assert tok4.shape == (2, 3, 1), tok4.shape
    assert bool(jnp.all(tok4 == ref4)), (tok4, ref4)

    print("KERNEL_OK")
</pallas_src>

<mosaic_0001>
module attributes {stable_mosaic.version = 11 : i64} {
  func.func @_greedy_kernel(%arg0: i32, %arg1: i32, %arg2: memref<2x512xbf16, #tpu.memory_space<vmem>>, %arg3: memref<2x1xi32, #tpu.memory_space<vmem>>, %arg4: memref<2x128xbf16, #tpu.memory_space<vmem>>, %arg5: memref<2x128xi32, #tpu.memory_space<vmem>>) attributes {dimension_semantics = [#tpu.dimension_semantics<parallel>, #tpu.dimension_semantics<arbitrary>], iteration_bounds = array<i64: 1, 1>, scalar_prefetch = 0 : i64, scratch_operands = 2 : i64, tpu.core_type = #tpu.core_type<tc>, window_params = [{transform_indices = @transform_0, window_bounds = array<i64: 2, 512>}, {transform_indices = @transform_1, window_bounds = array<i64: 2, 1>}]} {
    %c0_i32 = arith.constant 0 : i32
    %0 = arith.cmpi eq, %arg1, %c0_i32 : i32
    %1 = arith.extui %0 : i1 to i32
    %cst = arith.constant 0xFF80 : bf16
    %c0_i32_0 = arith.constant 0 : i32
    %2 = arith.cmpi ne, %1, %c0_i32_0 : i32
    scf.if %2 {
      %35 = vector.broadcast %cst : bf16 to vector<2x128xbf16>
      %c0_16 = arith.constant 0 : index
      %c0_17 = arith.constant 0 : index
      %36 = vector.load %arg4[%c0_16, %c0_17] : memref<2x128xbf16, #tpu.memory_space<vmem>>, vector<2x128xbf16>
      tpu.vector_store %arg4[%c0_16, %c0_17], %35 {strides = array<i32>} : memref<2x128xbf16, #tpu.memory_space<vmem>>, vector<2x128xbf16>,
      %c0_i32_18 = arith.constant 0 : i32
      %37 = vector.broadcast %c0_i32_18 : i32 to vector<2x128xi32>
      %c0_19 = arith.constant 0 : index
      %c0_20 = arith.constant 0 : index
      %38 = vector.load %arg5[%c0_19, %c0_20] : memref<2x128xi32, #tpu.memory_space<vmem>>, vector<2x128xi32>
      tpu.vector_store %arg5[%c0_19, %c0_20], %37 {strides = array<i32>} : memref<2x128xi32, #tpu.memory_space<vmem>>, vector<2x128xi32>,
    } else {
    }
    %c0 = arith.constant 0 : index
    %c0_1 = arith.constant 0 : index
    %3 = vector.load %arg4[%c0, %c0_1] : memref<2x128xbf16, #tpu.memory_space<vmem>>, vector<2x128xbf16>
    %c0_2 = arith.constant 0 : index
    %c0_3 = arith.constant 0 : index
    %4 = vector.load %arg5[%c0_2, %c0_3] : memref<2x128xi32, #tpu.memory_space<vmem>>, vector<2x128xi32>
    %c512_i32 = arith.constant 512 : i32
    %5 = arith.muli %arg1, %c512_i32 : i32
    %c0_4 = arith.constant 0 : index
    %c0_5 = arith.constant 0 : index
    %6 = vector.load %arg2[%c0_4, %c0_5] : memref<2x512xbf16, #tpu.memory_space<vmem>>, vector<2x128xbf16>
    %c0_i32_6 = arith.constant 0 : i32
    %7 = arith.addi %5, %c0_i32_6 : i32
    %8 = arith.cmpf ogt, %6, %3 : vector<2x128xbf16>
    %9 = arith.select %8, %6, %3 : vector<2x128xi1>, vector<2x128xbf16>
    %10 = vector.broadcast %7 : i32 to vector<2x128xi32>
    %11 = arith.select %8, %10, %4 : vector<2x128xi1>, vector<2x128xi32>
    %c0_7 = arith.constant 0 : index
    %c128 = arith.constant 128 : index
    %12 = vector.load %arg2[%c0_7, %c128] : memref<2x512xbf16, #tpu.memory_space<vmem>>, vector<2x128xbf16>
    %c128_i32 = arith.constant 128 : i32
    %13 = arith.addi %5, %c128_i32 : i32
    %14 = arith.cmpf ogt, %12, %9 : vector<2x128xbf16>
    %15 = arith.select %14, %12, %9 : vector<2x128xi1>, vector<2x128xbf16>
    %16 = vector.broadcast %13 : i32 to vector<2x128xi32>
    %17 = arith.select %14, %16, %11 : vector<2x128xi1>, vector<2x128xi32>
    %c0_8 = arith.constant 0 : index
    %c256 = arith.constant 256 : index
    %18 = vector.load %arg2[%c0_8, %c256] : memref<2x512xbf16, #tpu.memory_space<vmem>>, vector<2x128xbf16>
    %c256_i32 = arith.constant 256 : i32
    %19 = arith.addi %5, %c256_i32 : i32
    %20 = arith.cmpf ogt, %18, %15 : vector<2x128xbf16>
    %21 = arith.select %20, %18, %15 : vector<2x128xi1>, vector<2x128xbf16>
    %22 = vector.broadcast %19 : i32 to vector<2x128xi32>
    %23 = arith.select %20, %22, %17 : vector<2x128xi1>, vector<2x128xi32>
    %c0_9 = arith.constant 0 : index
    %c384 = arith.constant 384 : index
    %24 = vector.load %arg2[%c0_9, %c384] : memref<2x512xbf16, #tpu.memory_space<vmem>>, vector<2x128xbf16>
    %c384_i32 = arith.constant 384 : i32
    %25 = arith.addi %5, %c384_i32 : i32
    %26 = arith.cmpf ogt, %24, %21 : vector<2x128xbf16>
    %27 = arith.select %26, %24, %21 : vector<2x128xi1>, vector<2x128xbf16>
    %28 = vector.broadcast %25 : i32 to vector<2x128xi32>
    %29 = arith.select %26, %28, %23 : vector<2x128xi1>, vector<2x128xi32>
    %c0_10 = arith.constant 0 : index
    %c0_11 = arith.constant 0 : index
    %30 = vector.load %arg4[%c0_10, %c0_11] : memref<2x128xbf16, #tpu.memory_space<vmem>>, vector<2x128xbf16>
    tpu.vector_store %arg4[%c0_10, %c0_11], %27 {strides = array<i32>} : memref<2x128xbf16, #tpu.memory_space<vmem>>, vector<2x128xbf16>,
    %c0_12 = arith.constant 0 : index
    %c0_13 = arith.constant 0 : index
    %31 = vector.load %arg5[%c0_12, %c0_13] : memref<2x128xi32, #tpu.memory_space<vmem>>, vector<2x128xi32>
    tpu.vector_store %arg5[%c0_12, %c0_13], %29 {strides = array<i32>} : memref<2x128xi32, #tpu.memory_space<vmem>>, vector<2x128xi32>,
    %c0_i32_14 = arith.constant 0 : i32
    %32 = arith.cmpi eq, %arg1, %c0_i32_14 : i32
    %33 = arith.extui %32 : i1 to i32
    %c0_i32_15 = arith.constant 0 : i32
    %34 = arith.cmpi ne, %33, %c0_i32_15 : i32
    scf.if %34 {
      %c0_16 = arith.constant 0 : index
      %c0_17 = arith.constant 0 : index
      %35 = vector.load %arg4[%c0_16, %c0_17] : memref<2x128xbf16, #tpu.memory_space<vmem>>, vector<2x128xbf16>
      %36 = tpu.iota {dimensions = array<i32: 1>} : vector<2x128xi32>
      %c0_18 = arith.constant 0 : index
      %c0_19 = arith.constant 0 : index
      %37 = vector.load %arg5[%c0_18, %c0_19] : memref<2x128xi32, #tpu.memory_space<vmem>>, vector<2x128xi32>
      %38 = arith.addi %37, %36 : vector<2x128xi32>
      %cst_20 = arith.constant dense<0xFF80> : vector<2xbf16>
      %39 = vector.multi_reduction <maximumf>, %35, %cst_20 [1] : vector<2x128xbf16> to vector<2xbf16>
      %40 = vector.shape_cast %39 : vector<2xbf16> to vector<2x1xbf16>
      %41 = vector.broadcast %40 : vector<2x1xbf16> to vector<2x128xbf16>
      %42 = arith.cmpf oeq, %35, %41 : vector<2x128xbf16>
      %c2147483647_i32 = arith.constant 2147483647 : i32
      %43 = vector.broadcast %c2147483647_i32 : i32 to vector<2x128xi32>
      %44 = arith.select %42, %38, %43 : vector<2x128xi1>, vector<2x128xi32>
      %cst_21 = arith.constant dense<2147483647> : vector<2xi32>
      %45 = vector.multi_reduction <minsi>, %44, %cst_21 [1] : vector<2x128xi32> to vector<2xi32>
      %46 = vector.shape_cast %45 : vector<2xi32> to vector<2x1xi32>
      %c0_22 = arith.constant 0 : index
      %c0_23 = arith.constant 0 : index
      %47 = vector.load %arg3[%c0_22, %c0_23] : memref<2x1xi32, #tpu.memory_space<vmem>>, vector<2x1xi32>
      tpu.vector_store %arg3[%c0_22, %c0_23], %46 {strides = array<i32>} : memref<2x1xi32, #tpu.memory_space<vmem>>, vector<2x1xi32>,
    } else {
    }
    return
  }
  func.func @transform_0(%arg0: i32, %arg1: i32) -> (i32, i32) {
    %c0_i32 = arith.constant 0 : i32
    return %arg0, %arg1 : i32, i32
  }
  func.func @transform_1(%arg0: i32, %arg1: i32) -> (i32, i32) {
    %c0_i32 = arith.constant 0 : i32
    %c0_i32_0 = arith.constant 0 : i32
    return %arg0, %c0_i32 : i32, i32
  }
}

</mosaic_0001>

<bundles_post_ra>
// kernel: tpu_custom_call.1
= control target key start
LH: loop header
LB: loop body
LE: loop exit
PB: predicated region body
PF: predicated region fallthrough
CT: control target
= control target key end

     0   :  { %6 = vsyncpa [#allocation5], 0  ;;  %s139_s6 = smov [#allocation4]   ;;  %s167_s0 = inlined_call_operand.hbm [shape: bf16[2,512], index: 0, kind: input, shape index: {}]   ;;  %s168_s1 = inlined_call_operand.vmem [shape: s32[2,1], index: 1, kind: output, shape index: {}]  }
   0x1   :  { %s13_s7 = sshll.u32 %s139_s6, 4  ;;  %s115_s10 = scalar_lea.hbm %s167_s0, 64  ;;  %s14_s7 = int_to_ptr.vmem [resolvable:$true] %s13_s7 }
   0x2   :  { %p116_p0 = scmp.ne.s32.totalorder %s167_s0, %s115_s10  ;;  %p119_p1 = scmp.lt.u32.totalorder %s115_s10, %s167_s0 }
   0x4   :  { %p121_p2 = pnand %p119_p1, %p116_p0 }
   0x6   :  { %124 = shalt.err (!%p121_p2)
}
   0x7   :  { %s125_s15 = scalar_lea.vmem %s14_s7, 64  ;;  %p130_p4 = scmp.lt.s32.totalorder %s14_s7, %s14_s7 }
   0x8   :  { %p126_p3 = scmp.ne.s32.totalorder %s14_s7, %s125_s15  ;;  %p131_p5 = scmp.lt.s32.totalorder %s125_s15, %s125_s15 }
   0xa   :  { %p132_p6 = por %p131_p5, %p130_p4 }
   0xc   :  { %p133_p7 = pnand %p132_p6, %p126_p3 }
   0xe   :  { %136 = shalt.err (!%p133_p7)
}
   0xf   :  { %16 = dma.hbm_to_vmem [thread:$0]  %s167_s0, 64, %s14_s7, [#allocation5]  }
  0x10   :  { %137 = dma.done.wait [#allocation5], 64  }
  0x11   :  { %138 = vsyncadd [#allocation5], 4294967232  ;;  %v140_v0 = vmov 4286644096   ;;  %v141_v1 = vmov 0   ;;  %vm77_vm8 = vcmask 1040384   ;;  %v73_v26 = vlaneseq }
  0x12   :  { %27 = vst [vmem:[#allocation2] sm:$0x1] %v140_v0  ;;  %28 = vst [vmem:[#allocation3] sm:$0x3] %v141_v1  ;;  %v32_v2 = vld [vmem:[#allocation4] sm:$0x1] }
  0x13   :  { %v40_v4 = vld [vmem:[#allocation4 + $0x1] sm:$0x1]  ;;  %v49_v6 = vld [vmem:[#allocation4 + $0x2] sm:$0x1]  ;;  %v58_v11 = vld [vmem:[#allocation4 + $0x3] sm:$0x1] }
  0x14   :  { %v74_v27 = vand.u32 127, %v73_v26  ;;  %vm89_vm10 = vcmask 1041408   ;;  %vm105_vm13 = vcmask 1024  }
  0x19   :  { %v29_v3 = vld [vmem:[#allocation2] sm:$0x1]  ;;  %v30_v8 = vld [vmem:[#allocation3] sm:$0x3] }
  0x1a   :  { %vm33_vm0 = vcmp.gt.bf16.partialorder %v32_v2, %v29_v3 }
  0x1b   :  { %v34_v5 = vsel %vm33_vm0, %v32_v2, %v29_v3  ;;  %v36_v7 = vsel %vm33_vm0, 65537, %v141_v1 }
  0x1c   :  { %vm42_vm1 = vcmp.gt.bf16.partialorder %v40_v4, %v34_v5  ;;  %v37_v9 = vunpack.c.l.b16 %v36_v7 }
  0x1d   :  { %v43_v10 = vsel %vm42_vm1, %v40_v4, %v34_v5  ;;  %v45_v12 = vsel %vm42_vm1, 65537, %v141_v1 }
  0x1e   :  { %vm51_vm2 = vcmp.gt.bf16.partialorder %v49_v6, %v43_v10  ;;  %vm38_vm3 = vcmp.ne.s32.totalorder %v37_v9, 0  ;;  %v46_v13 = vunpack.c.l.b16 %v45_v12 }
  0x1f   :  { %v52_v14 = vsel %vm51_vm2, %v49_v6, %v43_v10  ;;  %v39_v15 = vsel %vm38_vm3, 0, %v30_v8  ;;  %v54_v16 = vsel %vm51_vm2, 65537, %v141_v1 }
  0x20   :  { %vm60_vm4 = vcmp.gt.bf16.partialorder %v58_v11, %v52_v14  ;;  %vm47_vm5 = vcmp.ne.s32.totalorder %v46_v13, 0  ;;  %v55_v17 = vunpack.c.l.b16 %v54_v16 }
  0x21   :  { %v61_v18 = vsel %vm60_vm4, %v58_v11, %v52_v14  ;;  %v48_v19 = vsel %vm47_vm5, 128, %v39_v15  ;;  %v63_v20 = vsel %vm60_vm4, 65537, %v141_v1 }
  0x22   :  { %67 = vst [vmem:[#allocation2] sm:$0x1] %v61_v18  ;;  %vm56_vm6 = vcmp.ne.s32.totalorder %v55_v17, 0  ;;  %v64_v21 = vunpack.c.l.b16 %v63_v20 }
  0x23   :  { %v57_v22 = vsel %vm56_vm6, 256, %v48_v19 }
  0x24   :  { %vm65_vm7 = vcmp.ne.s32.totalorder %v64_v21, 0 }
  0x25   :  { %v66_v23 = vsel %vm65_vm7, 384, %v57_v22 }
  0x26   :  { %68 = vst [vmem:[#allocation3] sm:$0x3] %v66_v23 }
  0x29   :  { %v72_v24 = vld [vmem:[#allocation2] sm:$0x1] }
  0x2a   :  { %v80_v25 = vsel %vm77_vm8, %v72_v24, 4286644096 }
  0x2b   :  { %82 = vmax.xlane.bf16.xlu0 %v80_v25 }
  0x2d   :  { %v75_v28 = vld [vmem:[#allocation3] sm:$0x3] }
  0x2e   :  { %v76_v30 = vadd.s32 %v75_v28, %v74_v27 }
  0xbc   :  { %v83_v29 = vpop.xlane.xlu0 %82 }
  0xbd   :  { %vm84_vm9 = vcmp.eq.bf16.partialorder %v72_v24, %v83_v29 }
  0xbe   :  { %v85_v31 = vsel %vm84_vm9, 65537, %v141_v1 }
  0xbf   :  { %v86_v32 = vunpack.c.l.b16 %v85_v31 }
  0xc1   :  { %vm87_vm11 = vcmp.ne.s32.totalorder %v86_v32, 0 }
  0xc2   :  { %v88_v33 = vsel %vm87_vm11, %v76_v30, 2147483647 }
  0xc3   :  { %v90_v34 = vsel %vm89_vm10, %v88_v33, 2147483647 }
  0xc4   :  { %v92_v35 = vshra.s32 %v90_v34, 16  ;;  %v91_v37 = vand.u32 65535, %v90_v34 }
  0xc6   :  { %v94_v36 = vcvt.s32.f32 %v92_v35  ;;  %v93_v39 = vcvt.s32.f32 %v91_v37 }
  0xc8   :  { %95 = vmin.xlane.f32.xlu0 %v94_v36 }
 0x155   :  { %v96_v38 = vpop.xlane.xlu0 %95 }
 0x156   :  { %vm97_vm12 = vcmp.eq.f32.partialorder %v94_v36, %v96_v38  ;;  %v102_v41 = vcvt.f32.s32 %v96_v38 }
 0x157   :  { %v98_v40 = vsel %vm97_vm12, %v93_v39, inf }
 0x158   :  { %99 = vmin.xlane.f32.xlu1 %v98_v40  ;;  %v103_v43 = vshll.u32 %v102_v41, 16 }
 0x1e5   :  { %v100_v42 = vpop.xlane.xlu1 %99 }
 0x1e6   :  { %v101_v44 = vcvt.f32.s32 %v100_v42 }
 0x1e8   :  { %v104_v45 = vadd.s32 %v103_v43, %v101_v44 }
 0x1ea   :  { %106 = vst.msk [vmem:[%s168_s1] sm:$0x3] %vm105_vm13, %v104_v45 }
 0x1eb   :  { %111 = vsyncpa [#allocation5], 1 }

</bundles_post_ra>
